<compile_context>
chip_gen: v7x
topology: tpu7x:2x2x1
jax: 0.10.0
libtpu: 0.0.40
codegen_flags: <defaults>
</compile_context>

<pallas_src>
import functools

import jax
import jax.numpy as jnp
from jax.experimental import pallas as pl
from jax.experimental.pallas import tpu as pltpu

N_PAD = 128          # fixed lane width for the selected-node axis
NEG_INF = -1.0e30    # additive mask value for invalid / padded lanes


def actor_kernel(xT_ref, wpack_ref, mask_ref, out_ref):
    # xT_ref   : (D, N_PAD)  VMEM  query_feat.T, zero-padded along lanes
    # wpack_ref: (H, D + 2)  VMEM  [W1 | b1 | w2] packed (torch Linear layout)
    # mask_ref : (1, N_PAD)  VMEM  additive mask: 0.0 valid, -1e30 invalid
    # out_ref  : (1, N_PAD)  VMEM  masked softmax (invalid lanes -> 0.0)
    D = xT_ref.shape[0]

    wp = wpack_ref[...]                       # (H, D + 2), tiny — load once
    w1 = wp[:, :D]                            # (H, D)
    b1 = wp[:, D:D + 1]                       # (H, 1)
    w2 = wp[:, D + 1:D + 2]                   # (H, 1)

    # Linear 1 + ReLU in transposed layout: hT = relu(W1 @ xT + b1) -> (H, N_PAD).
    # (16,32)@(32,128) — lane-dense MXU shape.
    hT = jnp.dot(w1, xT_ref[...], preferred_element_type=jnp.float32)
    hT = jnp.maximum(hT + b1, 0.0)

    # Linear 2 (output dim == 1) fused as a cross-sublane reduce:
    #   logits[0, n] = sum_h hT[h, n] * w2[h]            -> (1, N_PAD)
    # b2 dropped: constant shift, cancelled by the softmax.
    logits = jnp.sum(hT * w2, axis=0, keepdims=True) + mask_ref[...]

    # Masked softmax over the lane axis (== torch Softmax(dim=0) on the (N,1)
    # column, emitted directly in the transposed (1, N) layout).
    m = jnp.max(logits, axis=-1, keepdims=True)
    p = jnp.exp(logits - m)                   # padded lanes underflow to 0
    denom = jnp.sum(p, axis=-1, keepdims=True)
    out_ref[...] = p * pl.reciprocal(denom, approx=True)


@jax.jit
def _actor_core(query_feat, mask_neg, wpack):
    """One device dispatch: pad/transpose the features and run the kernel."""
    V, D = query_feat.shape
    xT = jnp.zeros((D, N_PAD), jnp.float32)
    xT = xT.at[:, :V].set(query_feat.astype(jnp.float32).T)
    return pl.pallas_call(
        actor_kernel,
        out_shape=jax.ShapeDtypeStruct((1, N_PAD), jnp.float32),
        in_specs=[
            pl.BlockSpec(memory_space=pltpu.MemorySpace.VMEM),   # x.T padded
            pl.BlockSpec(memory_space=pltpu.MemorySpace.VMEM),   # packed params
            pl.BlockSpec(memory_space=pltpu.MemorySpace.VMEM),   # additive mask
        ],
        out_specs=pl.BlockSpec(memory_space=pltpu.MemorySpace.VMEM),
    )(xT, wpack, mask_neg)


def pack_params(w1, b1, w2):
    """Pack [W1 | b1 | w2] -> (H, D+2). Do this once, outside the hot path."""
    H = w1.shape[0]
    return jnp.concatenate(
        [w1.astype(jnp.float32),
         b1.reshape(H, 1).astype(jnp.float32),
         w2.reshape(H, 1).astype(jnp.float32)], axis=1)


def actor_forward(query_feat, build_candidate_pool, possible_node, wpack):
    """Mirrors Actor.forward.

    query_feat: (V, D) f32; possible_node: Python list[bool] of length V.
    wpack: packed (H, D+2) parameters from pack_params (b2 cancelled by softmax).
    Returns (origin_action (1, N), node_for_select list).
    """
    del build_candidate_pool  # unused by the forward pass (parity with PyTorch)
    V = query_feat.shape[0]

    # Host-side data-dependent scan, exactly like the Python loop in torch.
    node_for_select = [i for i, s in enumerate(possible_node) if s]
    if not node_for_select:
        raise ValueError("possible_node has no selectable vertices (N == 0)")

    # Fixed-shape additive mask: 0 for selectable nodes, -1e30 elsewhere.
    mask_vals = [0.0 if (i < V and possible_node[i]) else NEG_INF
                 for i in range(N_PAD)]
    mask_neg = jnp.asarray(mask_vals, jnp.float32).reshape(1, N_PAD)

    probs_full = _actor_core(query_feat, mask_neg, wpack)        # (1, N_PAD)

    # Tiny static-index slice back to the (1, N) view the caller expects;
    # invalid lanes carry exactly zero mass so this is the same distribution.
    idx = jnp.asarray(node_for_select, dtype=jnp.int32)
    origin_action = probs_full[:, idx]                           # (1, N)
    return origin_action, node_for_select


def init_params(key, in_dim, hidden_dim):
    """Deterministic init mimicking nn.Linear defaults (uniform +-1/sqrt(fan_in))."""
    k1, k2, k3, k4 = jax.random.split(key, 4)
    bound1 = 1.0 / jnp.sqrt(in_dim)
    w1 = jax.random.uniform(k1, (hidden_dim, in_dim), jnp.float32, -bound1, bound1)
    b1 = jax.random.uniform(k2, (hidden_dim,), jnp.float32, -bound1, bound1)
    bound2 = 1.0 / jnp.sqrt(hidden_dim)
    w2 = jax.random.uniform(k3, (hidden_dim,), jnp.float32, -bound2, bound2)
    b2 = jax.random.uniform(k4, (), jnp.float32, -bound2, bound2)
    return w1, b1, w2, b2


if __name__ == "__main__":
    # Shapes consistent with the module: args.out_dim = 32 (post-GCN feature
    # dim), hidden = out_dim // 2 = 16, query graph with 8 vertices, 5 of them
    # currently selectable.
    out_dim, hidden, query_size = 32, 16, 8

    key = jax.random.PRNGKey(0)
    kx, kp = jax.random.split(key)
    query_feat = jax.random.normal(kx, (query_size, out_dim), jnp.float32)
    possible_node = [True, False, True, True, False, True, False, True]
    build_candidate_pool = [False] * query_size   # unused by forward

    w1, b1, w2, b2 = init_params(kp, out_dim, hidden)
    wpack = pack_params(w1, b1, w2)               # b2 dropped (softmax-invariant)

    origin_action, node_for_select = actor_forward(
        query_feat, build_candidate_pool, possible_node, wpack)
    origin_action = jax.block_until_ready(origin_action)

    # Pure-JAX reference of the same forward pass (including b2, to check that
    # dropping it in the kernel is indeed a no-op for the softmax).
    pf = query_feat[jnp.asarray(node_for_select)]
    h_ref = jnp.maximum(pf @ w1.T + b1, 0.0)
    logits_ref = h_ref @ w2.reshape(hidden) + b2
    ref = jax.nn.softmax(logits_ref, axis=0).reshape(1, -1)

    assert origin_action.shape == (1, len(node_for_select)), origin_action.shape
    # approx reciprocal (EUP) -> slightly looser tolerance than exact divide.
    assert jnp.allclose(origin_action, ref, atol=1e-3, rtol=1e-3), (origin_action, ref)
    assert jnp.allclose(jnp.sum(origin_action), 1.0, atol=1e-3)

    print("KERNEL_OK")
</pallas_src>

<mosaic_0001>
module attributes {stable_mosaic.version = 11 : i64} {
  func.func @actor_kernel(%arg0: memref<32x128xf32, #tpu.memory_space<vmem>>, %arg1: memref<16x34xf32, #tpu.memory_space<vmem>>, %arg2: memref<1x128xf32, #tpu.memory_space<vmem>>, %arg3: memref<1x128xf32, #tpu.memory_space<vmem>>) attributes {dimension_semantics = [], scalar_prefetch = 0 : i64, scratch_operands = 0 : i64, tpu.core_type = #tpu.core_type<tc>} {
    %c0 = arith.constant 0 : index
    %c0_0 = arith.constant 0 : index
    %0 = vector.load %arg1[%c0, %c0_0] : memref<16x34xf32, #tpu.memory_space<vmem>>, vector<16x34xf32>
    %1 = vector.extract_strided_slice %0 {offsets = [0, 0], sizes = [16, 32], strides = [1, 1]} : vector<16x34xf32> to vector<16x32xf32>
    %2 = vector.extract_strided_slice %0 {offsets = [0, 32], sizes = [16, 1], strides = [1, 1]} : vector<16x34xf32> to vector<16x1xf32>
    %3 = vector.extract_strided_slice %0 {offsets = [0, 33], sizes = [16, 1], strides = [1, 1]} : vector<16x34xf32> to vector<16x1xf32>
    %c0_1 = arith.constant 0 : index
    %c0_2 = arith.constant 0 : index
    %4 = vector.load %arg0[%c0_1, %c0_2] : memref<32x128xf32, #tpu.memory_space<vmem>>, vector<32x128xf32>
    %cst = arith.constant dense<0.000000e+00> : vector<16x128xf32>
    %5 = tpu.matmul %1, %4, %cst {dimension_numbers = #tpu.dot_dimension_numbers<[1], [0], [0], [1], [0, 0, 1, 1], [], []>} : vector<16x32xf32>, vector<32x128xf32>, vector<16x128xf32> -> vector<16x128xf32>
    %6 = vector.broadcast %2 : vector<16x1xf32> to vector<16x128xf32>
    %7 = arith.addf %5, %6 : vector<16x128xf32>
    %cst_3 = arith.constant 0.000000e+00 : f32
    %8 = vector.broadcast %cst_3 : f32 to vector<16x128xf32>
    %9 = arith.maximumf %7, %8 : vector<16x128xf32>
    %10 = vector.broadcast %3 : vector<16x1xf32> to vector<16x128xf32>
    %11 = arith.mulf %9, %10 : vector<16x128xf32>
    %cst_4 = arith.constant dense<0.000000e+00> : vector<128xf32>
    %12 = vector.multi_reduction <add>, %11, %cst_4 [0] : vector<16x128xf32> to vector<128xf32>
    %13 = vector.shape_cast %12 : vector<128xf32> to vector<1x128xf32>
    %c0_5 = arith.constant 0 : index
    %c0_6 = arith.constant 0 : index
    %14 = vector.load %arg2[%c0_5, %c0_6] : memref<1x128xf32, #tpu.memory_space<vmem>>, vector<1x128xf32>
    %15 = arith.addf %13, %14 : vector<1x128xf32>
    %cst_7 = arith.constant dense<0xFF800000> : vector<1xf32>
    %16 = vector.multi_reduction <maximumf>, %15, %cst_7 [1] : vector<1x128xf32> to vector<1xf32>
    %17 = vector.shape_cast %16 : vector<1xf32> to vector<1x1xf32>
    %18 = vector.broadcast %17 : vector<1x1xf32> to vector<1x128xf32>
    %19 = arith.subf %15, %18 : vector<1x128xf32>
    %20 = math.exp %19 : vector<1x128xf32>
    %cst_8 = arith.constant dense<0.000000e+00> : vector<1xf32>
    %21 = vector.multi_reduction <add>, %20, %cst_8 [1] : vector<1x128xf32> to vector<1xf32>
    %22 = vector.shape_cast %21 : vector<1xf32> to vector<1x1xf32>
    %23 = tpu.reciprocal %22 {approx = true} : vector<1x1xf32> -> vector<1x1xf32>
    %24 = vector.broadcast %23 : vector<1x1xf32> to vector<1x128xf32>
    %25 = arith.mulf %20, %24 : vector<1x128xf32>
    %c0_9 = arith.constant 0 : index
    %c0_10 = arith.constant 0 : index
    %26 = vector.load %arg3[%c0_9, %c0_10] : memref<1x128xf32, #tpu.memory_space<vmem>>, vector<1x128xf32>
    tpu.vector_store %arg3[%c0_9, %c0_10], %25 {strides = array<i32>} : memref<1x128xf32, #tpu.memory_space<vmem>>, vector<1x128xf32>,
    return
  }
}

</mosaic_0001>

<bundles_post_ra>
// kernel: _actor_core.1
= control target key start
LH: loop header
LB: loop body
LE: loop exit
PB: predicated region body
PF: predicated region fallthrough
CT: control target
= control target key end

     0   :  { %vm31_vm0 = vcmask 261120   ;;  %v220_v6 = vmov 32   ;;  %v221_v7 = vmov 33   ;;  %s278_s0 = inlined_call_operand.vmem [shape: f32[32,128], index: 0, kind: input, shape index: {}]   ;;  %s279_s1 = inlined_call_operand.vmem [shape: f32[16,34], index: 1, kind: input, shape index: {}]   ;;  %s280_s2 = inlined_call_operand.vmem [shape: f32[1,128], index: 2, kind: input, shape index: {}]   ;;  %s281_s3 = inlined_call_operand.hbm [shape: f32[1,128], index: 3, kind: output, shape index: {}]  }
   0x1   :  { %v17_v0 = vld [vmem:[%s278_s0] sm:$0xff]  ;;  %v18_v1 = vld [vmem:[%s278_s0 + $0x8] sm:$0xff]  ;;  %v19_v2 = vld [vmem:[%s278_s0 + $0x10] sm:$0xff]  ;;  %189 = vset.pattern.permute.xlu0 %v220_v6  ;;  %190 = vset.pattern.permute.xlu1 %v221_v7 }
   0x2   :  { %v178_v3 = vpack.c.bf16 %v18_v1, %v17_v0  ;;  %v20_v4 = vld [vmem:[%s278_s0 + $0x18] sm:$0xff]  ;;  %v15_v5 = vld [vmem:[%s279_s1] sm:$0xff] }
   0x3   :  { %v182_v8 = vpack.c.bf16 %v20_v4, %v19_v2  ;;  %175 = vmatprep.mubr.msk.f32.mxu0 %vm31_vm0, %v15_v5  ;;  %23 = vperm.xlu0 %189, %v15_v5  }
   0x4   :  { %8 = vsyncpa [#allocation3], 0  ;;  %179 = vmatprep.subr.bf16.mxu0 %v178_v3  ;;  %114 = vperm.xlu1 %190, %v15_v5   ;;  %v16_v9 = vld [vmem:[%s279_s1 + $0x8] sm:$0xff]  ;;  %v130_v28 = vld [vmem:[%s280_s2] sm:$0x1]  ;;  %vm132_vm1 = vcmask 1040384  }
   0x5   :  { %181 = vmatpush3.bf16.msra.mxu0 %v178_v3  ;;  %s222_s24 = smov [#allocation2]  }
   0x6   :  { %183 = vmatprep.subr.bf16.mxu0 %v182_v8  ;;  %s151_s25 = sshll.u32 %s222_s24, 4  ;;  %s152_s25 = int_to_ptr.vmem [resolvable:$true] %s151_s25 }
   0x7   :  { %28 = vperm.xlu0 %189, %v16_v9   ;;  %s196_s2 = scalar_lea.vmem %s152_s25, 16  ;;  %s200_s26 = scalar_lea.vmem %s152_s25, 32 }
   0x8   :  { %118 = vperm.xlu1 %190, %v16_v9   ;;  %p197_p0 = scmp.ne.s32.totalorder %s152_s25, %s196_s2  ;;  %p201_p1 = scmp.lt.s32.totalorder %s152_s25, %s152_s25 }
   0x9   :  { %185 = vmatpush3.bf16.msra.mxu0 %v182_v8  ;;  %p202_p2 = scmp.lt.s32.totalorder %s200_s26, %s196_s2 }
   0xb   :  { %191 = vset.pattern.permute.xlu0 %v221_v7  ;;  %p203_p3 = por %p202_p2, %p201_p1 }
   0xc   :  { %176 = vmatmul.mubr.msk.f32.vlgmr.msra.gmra.mrb[0].mxu0 %vm31_vm0, %v16_v9 }
   0xd   :  { %p204_p4 = pnand %p203_p3, %p197_p0 }
  0x82   :  { %v24_v10 = vpop.permute.xlu0 %23 }
  0x83   :  { %v115_v11 = vpop.permute.xlu1 %114 }
  0x86   :  { %v29_v12 = vpop.permute.xlu0 %28 }
  0x87   :  { %v119_v18 = vpop.permute.xlu1 %118 }
  0xdf   :  { %v177_v13 = vpop.f32.mrb[0].mxu0 }
  0xe0   :  { %v108_v14 = vadd.f32 %v177_v13, %v29_v12  ;;  %v102_v15 = vpop.f32.mrb[1].mxu0 }
  0xe1   :  { %v103_v16 = vadd.f32 %v102_v15, %v24_v10 }
  0xe2   :  { %v112_v17 = vmax.f32 %v108_v14, 0.0 }
  0xe3   :  { %v111_v19 = vmax.f32 %v103_v16, 0.0 }
  0xe4   :  { %v122_v20 = vmul.f32 %v119_v18, %v112_v17 }
  0xe5   :  { %v121_v21 = vmul.f32 %v115_v11, %v111_v19 }
  0xe7   :  { %v123_v22 = vadd.f32 %v122_v20, %v121_v21 }
  0xe9   :  { %v124_v23 = vrot.slane %v123_v22, 4 }
  0xeb   :  { %v125_v24 = vadd.f32 %v124_v23, %v123_v22 }
  0xed   :  { %v126_v25 = vrot.slane %v125_v24, 2 }
  0xef   :  { %v127_v26 = vadd.f32 %v126_v25, %v125_v24 }
  0xf1   :  { %v128_v27 = vrot.slane %v127_v26, 1 }
  0xf3   :  { %v129_v29 = vadd.f32 %v128_v27, %v127_v26 }
  0xf5   :  { %v131_v30 = vadd.f32 %v130_v28, %v129_v29 }
  0xf7   :  { %v133_v31 = vsel %vm132_vm1, %v131_v30, -inf }
  0xf8   :  { %134 = vmax.xlane.f32.xlu0 %v133_v31 }
 0x185   :  { %v135_v32 = vpop.xlane.xlu0 %134 }
 0x186   :  { %v136_v33 = vsub.f32 %v131_v30, %v135_v32 }
 0x188   :  { %v137_v34 = vmul.f32 1.442695, %v136_v33 }
 0x18a   :  { %192 = vpow2.f32 %v137_v34 }
 0x194   :  { %v193_v35 = vpop.eup %192 }
 0x195   :  { %v139_v36 = vsel %vm132_vm1, %v193_v35, 0.0 }
 0x196   :  { %140 = vadd.xlane.f32.xlu1 %v139_v36 }
 0x223   :  { %v141_v37 = vpop.xlane.xlu1 %140 }
 0x224   :  { %194 = vrcp.f32 %v141_v37 }
 0x22e   :  { %v195_v38 = vpop.eup %194 }
 0x22f   :  { %v143_v39 = vmul.f32 %v195_v38, %v193_v35 }
 0x231   :  { %144 = vst [vmem:[#allocation2] sm:$0x1] %v143_v39 }
 0x232   :  { %207 = shalt.err (!%p204_p4)
}
 0x233   :  { %s208_s29 = scalar_lea.hbm %s281_s3, 16 }
 0x234   :  { %p209_p5 = scmp.ne.s32.totalorder %s281_s3, %s208_s29  ;;  %p212_p6 = scmp.lt.u32.totalorder %s208_s29, %s281_s3 }
 0x236   :  { %p214_p7 = pnand %p212_p6, %p209_p5 }
 0x238   :  { %217 = shalt.err (!%p214_p7)
}
 0x239   :  { %154 = dma.vmem_to_hbm [thread:$0]  %s152_s25, 16, %s281_s3, [#allocation3]  }
 0x23a   :  { %218 = dma.done.wait [#allocation3], 16  }
 0x23b   :  { %219 = vsyncadd [#allocation3], 4294967280 }
 0x23c   :  { %158 = vsyncpa [#allocation3], 1 }

</bundles_post_ra>
